<compile_context>
chip_gen: v7x
topology: tpu7x:2x2x1
jax: 0.10.0
libtpu: 0.0.40
codegen_flags: <defaults>
</compile_context>

<pallas_src>
import functools
import math

import jax
import jax.numpy as jnp
from jax import lax
from jax.experimental import pallas as pl
from jax.experimental.pallas import tpu as pltpu


_NEG_BIG = -1e30   # large finite negative (avoids -inf -> NaN on masked rows)


@functools.lru_cache(maxsize=None)
def _vmem_limit_bytes():
    """Generation-aware VMEM cap (v5e/v6e: 128 MiB physical, v7x: 64 MiB)."""
    try:
        cap = int(pltpu.get_tpu_info().vmem_capacity_bytes)
        if cap > 0:
            return max(32 * 1024 * 1024, min(cap * 3 // 4, 96 * 1024 * 1024))
    except Exception:
        pass
    return 48 * 1024 * 1024   # safe everywhere (<= v7x 64 MiB physical)


def _pick_tile(dim, target, unit):
    """Largest power-of-two-scaled tile <= target (>= unit) dividing dim, else full dim."""
    t = target
    while t >= unit:
        if dim % t == 0:
            return t
        t //= 2
    return dim  # full extent — always a legal block shape


# ----------------------------- Linear kernel --------------------------------
def _linear_kernel(x_ref, w_ref, b_ref, o_ref, acc_ref):
    k = pl.program_id(2)

    @pl.when(k == 0)
    def _init():
        acc_ref[...] = jnp.zeros_like(acc_ref)

    acc_ref[...] += jnp.dot(x_ref[...], w_ref[...],
                            preferred_element_type=jnp.float32)

    @pl.when(k == pl.num_programs(2) - 1)
    def _finalize():
        o_ref[...] = (acc_ref[...] + b_ref[...].astype(jnp.float32)).astype(o_ref.dtype)


def linear(x2d, w, b, *, tm_target=512, tn_target=512, tk_target=512):
    M, K = x2d.shape
    K2, N = w.shape
    assert K == K2 and b.shape == (1, N)
    tm = _pick_tile(M, tm_target, 8)
    tn = _pick_tile(N, tn_target, 128)
    tk = _pick_tile(K, tk_target, 128)
    grid = (M // tm, N // tn, K // tk)
    itemsize = x2d.dtype.itemsize
    return pl.pallas_call(
        _linear_kernel,
        out_shape=jax.ShapeDtypeStruct((M, N), x2d.dtype),
        grid_spec=pltpu.PrefetchScalarGridSpec(
            num_scalar_prefetch=0,
            grid=grid,
            in_specs=[
                pl.BlockSpec((tm, tk), lambda i, j, k: (i, k)),
                pl.BlockSpec((tk, tn), lambda i, j, k: (k, j)),
                pl.BlockSpec((1, tn), lambda i, j, k: (0, j)),
            ],
            out_specs=pl.BlockSpec((tm, tn), lambda i, j, k: (i, j)),
            scratch_shapes=[pltpu.VMEM((tm, tn), jnp.float32)],
        ),
        compiler_params=pltpu.CompilerParams(
            dimension_semantics=("parallel", "parallel", "arbitrary"),
            vmem_limit_bytes=_vmem_limit_bytes(),
        ),
        cost_estimate=pl.CostEstimate(
            flops=2 * M * N * K,
            transcendentals=0,
            bytes_accessed=(M * K + K * N + M * N + N) * itemsize,
        ),
    )(x2d, w, b)


# --------------------------- Flash attention kernel --------------------------
def _flash_attn_kernel(q_ref, k_ref, v_ref, o_ref, qs_sc, m_sc, l_sc, acc_sc,
                       *, n_head, head_dim, tq, tk):
    qi = pl.program_id(1)
    ki = pl.program_id(2)
    q_start = qi * tq
    k_start = ki * tk

    @pl.when(ki == 0)
    def _init():
        # Pre-scale q once per (b, q-block); the q block is resident across ki,
        # so this removes n_head scale-multiplies from every KV step.
        scale = 1.0 / math.sqrt(head_dim)
        qs_sc[...] = (q_ref[0] * scale).astype(qs_sc.dtype)
        m_sc[...] = jnp.full(m_sc.shape, _NEG_BIG, m_sc.dtype)
        l_sc[...] = jnp.zeros(l_sc.shape, l_sc.dtype)
        acc_sc[...] = jnp.zeros(acc_sc.shape, acc_sc.dtype)

    def _update(apply_mask):
        k_all = k_ref[0]            # (tk, C), native dtype (bf16/f32)
        v_all = v_ref[0]            # (tk, C)
        if apply_mask:
            row = q_start + lax.broadcasted_iota(jnp.int32, (tq, tk), 0)
            col = k_start + lax.broadcasted_iota(jnp.int32, (tq, tk), 1)
            causal = col <= row
        # TODO(synk): if n_head is large (>=8) and profiling shows spills, move
        # heads onto a grid axis instead of this unrolled loop.
        for h in range(n_head):
            sl = slice(h * head_dim, (h + 1) * head_dim)
            qh = qs_sc[:, sl]                  # pre-scaled q slice
            kh = k_all[:, sl]
            vh = v_all[:, sl]

            # q @ k^T without materializing k.T: contract on last dims.
            s = lax.dot_general(qh, kh, (((1,), (1,)), ((), ())),
                                preferred_element_type=jnp.float32)   # (tq, tk) f32
            if apply_mask:
                s = jnp.where(causal, s, _NEG_BIG)

            m_prev = m_sc[h]                                          # (tq, 1)
            m_new = jnp.maximum(m_prev, jnp.max(s, axis=-1, keepdims=True))
            alpha = jnp.exp(m_prev - m_new)
            p = jnp.exp(s - m_new)                                    # f32 softmax math
            l_sc[h] = alpha * l_sc[h] + jnp.sum(p, axis=-1, keepdims=True)
            # Lane-dense (tq, C) accumulator: each head writes its own lane slice.
            acc_sc[:, sl] = alpha * acc_sc[:, sl] + jnp.dot(
                p.astype(vh.dtype), vh, preferred_element_type=jnp.float32)
            m_sc[h] = m_new

    # Fully below the diagonal: every key in this block is attendable by every
    # query in the q block -> skip the iota/mask path entirely.
    @pl.when(k_start + (tk - 1) <= q_start)
    def _fully_visible():
        _update(apply_mask=False)

    # Block intersects the diagonal: apply the causal mask.
    @pl.when(jnp.logical_and(k_start + (tk - 1) > q_start,
                             k_start <= q_start + (tq - 1)))
    def _diagonal():
        _update(apply_mask=True)

    # Blocks with k_start > q_start + tq - 1 are skipped entirely (and their
    # KV DMA is elided by the clamped index_map in the wrapper).

    @pl.when(ki == pl.num_programs(2) - 1)
    def _finalize():
        for h in range(n_head):
            sl = slice(h * head_dim, (h + 1) * head_dim)
            # exact reciprocal in the (rare) finalize step keeps 1e-4 tolerance
            inv_l = pl.reciprocal(l_sc[h], approx=False)
            acc_sc[:, sl] = acc_sc[:, sl] * inv_l
        # single lane-dense (tq, C) store — no concatenate, no masked stores
        o_ref[0] = acc_sc[...].astype(o_ref.dtype)


def flash_attention(qkv, n_head, *, tq_target=256, tk_target=256):
    """Causal multi-head attention over a fused qkv tensor of shape (B, T, 3C)."""
    B, T, C3 = qkv.shape
    assert C3 % 3 == 0
    C = C3 // 3
    assert C % n_head == 0
    head_dim = C // n_head
    tq = _pick_tile(T, tq_target, 8)
    tk = _pick_tile(T, tk_target, 8)
    grid = (B, T // tq, T // tk)

    if C % 128 == 0:
        # Fused path: q/k/v are lane-blocks 0/1/2 of the SAME (B, T, 3C) HBM
        # array, selected purely via BlockSpec index_maps (no HBM split copies).
        inputs = (qkv, qkv, qkv)
        lane_blk = (0, 1, 2)
    else:
        # Fallback when C is not 128-lane aligned: block last-dim must equal
        # the full array last-dim, so split in HBM (extra copy, small C only).
        inputs = tuple(jnp.split(qkv, 3, axis=-1))
        lane_blk = (0, 0, 0)

    def q_map(off):
        return lambda b, qi, ki: (b, qi, off)

    def kv_map(off):
        def _map(b, qi, ki):
            # Clamp above-diagonal (causally skipped) KV blocks to the last
            # needed block: consecutive grid steps then repeat the same block
            # index and Pallas elides the DMA (~halves KV HBM traffic).
            kmax = (qi * tq + (tq - 1)) // tk
            return (b, jnp.minimum(ki, kmax), off)
        return _map

    kernel = functools.partial(_flash_attn_kernel, n_head=n_head,
                               head_dim=head_dim, tq=tq, tk=tk)
    itemsize = qkv.dtype.itemsize
    return pl.pallas_call(
        kernel,
        out_shape=jax.ShapeDtypeStruct((B, T, C), qkv.dtype),
        grid_spec=pltpu.PrefetchScalarGridSpec(
            num_scalar_prefetch=0,
            grid=grid,
            in_specs=[
                pl.BlockSpec((1, tq, C), q_map(lane_blk[0])),
                pl.BlockSpec((1, tk, C), kv_map(lane_blk[1])),
                pl.BlockSpec((1, tk, C), kv_map(lane_blk[2])),
            ],
            out_specs=pl.BlockSpec((1, tq, C), lambda b, qi, ki: (b, qi, 0)),
            scratch_shapes=[
                pltpu.VMEM((tq, C), qkv.dtype),              # pre-scaled q (resident)
                pltpu.VMEM((n_head, tq, 1), jnp.float32),    # running max
                pltpu.VMEM((n_head, tq, 1), jnp.float32),    # running sum
                pltpu.VMEM((tq, C), jnp.float32),            # lane-dense output accumulator
            ],
        ),
        compiler_params=pltpu.CompilerParams(
            dimension_semantics=("parallel", "parallel", "arbitrary"),
            vmem_limit_bytes=_vmem_limit_bytes(),
        ),
        cost_estimate=pl.CostEstimate(
            flops=2 * B * T * T * C,                 # causal ~halves the dense 4*B*T*T*C
            transcendentals=B * n_head * T * T // 2,
            bytes_accessed=int((2 * B * T * C + B * (T // tq) * T * C) * itemsize),
        ),
    )(*inputs)


# ------------------------------ Full forward ---------------------------------
def causal_self_attention(x, params, n_head, *, tq_target=256, tk_target=256):
    """Forward pass of CausalSelfAttention (eval mode, dropout = identity)."""
    B, T, C = x.shape
    assert C % n_head == 0

    # c_attn: (B*T, C) @ (C, 3C) + (3C,)
    qkv = linear(x.reshape(B * T, C), params["w_attn"], params["b_attn"])
    qkv = qkv.reshape(B, T, 3 * C)        # metadata-only reshape, no jnp.split

    y = flash_attention(qkv, n_head, tq_target=tq_target, tk_target=tk_target)

    # c_proj + resid_dropout (identity in eval)
    y = linear(y.reshape(B * T, C), params["w_proj"], params["b_proj"])
    return y.reshape(B, T, C)


# ----------------------------- Pure-JAX reference ----------------------------
def causal_self_attention_ref(x, params, n_head):
    B, T, C = x.shape
    hs = C // n_head
    qkv = x @ params["w_attn"] + params["b_attn"][0]
    q, k, v = jnp.split(qkv, 3, axis=-1)

    def to_heads(t):
        return t.reshape(B, T, n_head, hs).transpose(0, 2, 1, 3)

    q, k, v = to_heads(q), to_heads(k), to_heads(v)
    s = jnp.einsum("bhqd,bhkd->bhqk", q, k) / math.sqrt(hs)
    mask = jnp.tril(jnp.ones((T, T), dtype=bool))
    s = jnp.where(mask[None, None], s, -jnp.inf)
    p = jax.nn.softmax(s, axis=-1)
    y = jnp.einsum("bhqk,bhkd->bhqd", p, v)
    y = y.transpose(0, 2, 1, 3).reshape(B, T, C)
    return y @ params["w_proj"] + params["b_proj"][0]


# ------------------------------------ main ------------------------------------
if __name__ == "__main__":
    # config: n_embd=128, n_head=4, bias=True, dropout=0.0, block_size >= T.
    # C=128 keeps q/k/v lane-blocks 128-aligned so the fused-qkv path is used.
    B, T, C, n_head = 2, 32, 128, 4

    key = jax.random.PRNGKey(0)
    k1, k2, k3, k4, k5 = jax.random.split(key, 5)
    params = {
        "w_attn": jax.random.normal(k1, (C, 3 * C), jnp.float32) * 0.02,
        "b_attn": jax.random.normal(k2, (1, 3 * C), jnp.float32) * 0.02,
        "w_proj": jax.random.normal(k3, (C, C), jnp.float32) * 0.02,
        "b_proj": jax.random.normal(k4, (1, C), jnp.float32) * 0.02,
    }
    x = jax.random.normal(k5, (B, T, C), jnp.float32)

    # Small tile targets (8) so the tiny test exercises multi-block KV grids,
    # causal block skipping, the clamped KV DMA and both mask branches.
    # Production defaults are 256.
    y = jax.block_until_ready(
        causal_self_attention(x, params, n_head, tq_target=8, tk_target=8))
    y_ref = causal_self_attention_ref(x, params, n_head)

    assert y.shape == (B, T, C)
    assert jnp.allclose(y, y_ref, atol=1e-4, rtol=1e-4), "mismatch vs reference"

    print("KERNEL_OK")
</pallas_src>

<mosaic_0001>
module attributes {stable_mosaic.version = 11 : i64} {
  func.func @_linear_kernel(%arg0: i32, %arg1: i32, %arg2: i32, %arg3: memref<64x128xf32, #tpu.memory_space<vmem>>, %arg4: memref<128x128xf32, #tpu.memory_space<vmem>>, %arg5: memref<1x128xf32, #tpu.memory_space<vmem>>, %arg6: memref<64x128xf32, #tpu.memory_space<vmem>>, %arg7: memref<64x128xf32, #tpu.memory_space<vmem>>) attributes {dimension_semantics = [#tpu.dimension_semantics<parallel>, #tpu.dimension_semantics<parallel>, #tpu.dimension_semantics<arbitrary>], iteration_bounds = array<i64: 1, 3, 1>, scalar_prefetch = 0 : i64, scratch_operands = 1 : i64, tpu.core_type = #tpu.core_type<tc>, window_params = [{transform_indices = @transform_0, window_bounds = array<i64: 64, 128>}, {transform_indices = @transform_1, window_bounds = array<i64: 128, 128>}, {transform_indices = @transform_2, window_bounds = array<i64: 1, 128>}, {transform_indices = @transform_3, window_bounds = array<i64: 64, 128>}]} {
    %c0_i32 = arith.constant 0 : i32
    %0 = arith.cmpi eq, %arg2, %c0_i32 : i32
    %1 = arith.extui %0 : i1 to i32
    %c0_i32_0 = arith.constant 0 : i32
    %2 = arith.cmpi ne, %1, %c0_i32_0 : i32
    scf.if %2 {
      %cst_10 = arith.constant 0.000000e+00 : f32
      %12 = vector.broadcast %cst_10 : f32 to vector<64x128xf32>
      %c0_11 = arith.constant 0 : index
      %c0_12 = arith.constant 0 : index
      %13 = vector.load %arg7[%c0_11, %c0_12] : memref<64x128xf32, #tpu.memory_space<vmem>>, vector<64x128xf32>
      tpu.vector_store %arg7[%c0_11, %c0_12], %12 {strides = array<i32>} : memref<64x128xf32, #tpu.memory_space<vmem>>, vector<64x128xf32>,
    } else {
    }
    %c0 = arith.constant 0 : index
    %c0_1 = arith.constant 0 : index
    %3 = vector.load %arg7[%c0, %c0_1] : memref<64x128xf32, #tpu.memory_space<vmem>>, vector<64x128xf32>
    %c0_2 = arith.constant 0 : index
    %c0_3 = arith.constant 0 : index
    %4 = vector.load %arg3[%c0_2, %c0_3] : memref<64x128xf32, #tpu.memory_space<vmem>>, vector<64x128xf32>
    %c0_4 = arith.constant 0 : index
    %c0_5 = arith.constant 0 : index
    %5 = vector.load %arg4[%c0_4, %c0_5] : memref<128x128xf32, #tpu.memory_space<vmem>>, vector<128x128xf32>
    %cst = arith.constant dense<0.000000e+00> : vector<64x128xf32>
    %6 = tpu.matmul %4, %5, %cst {dimension_numbers = #tpu.dot_dimension_numbers<[1], [0], [0], [1], [0, 0, 1, 1], [], []>} : vector<64x128xf32>, vector<128x128xf32>, vector<64x128xf32> -> vector<64x128xf32>
    %7 = arith.addf %3, %6 : vector<64x128xf32>
    %c0_6 = arith.constant 0 : index
    %c0_7 = arith.constant 0 : index
    %8 = vector.load %arg7[%c0_6, %c0_7] : memref<64x128xf32, #tpu.memory_space<vmem>>, vector<64x128xf32>
    tpu.vector_store %arg7[%c0_6, %c0_7], %7 {strides = array<i32>} : memref<64x128xf32, #tpu.memory_space<vmem>>, vector<64x128xf32>,
    %c0_i32_8 = arith.constant 0 : i32
    %9 = arith.cmpi eq, %arg2, %c0_i32_8 : i32
    %10 = arith.extui %9 : i1 to i32
    %c0_i32_9 = arith.constant 0 : i32
    %11 = arith.cmpi ne, %10, %c0_i32_9 : i32
    scf.if %11 {
      %c0_10 = arith.constant 0 : index
      %c0_11 = arith.constant 0 : index
      %12 = vector.load %arg7[%c0_10, %c0_11] : memref<64x128xf32, #tpu.memory_space<vmem>>, vector<64x128xf32>
      %c0_12 = arith.constant 0 : index
      %c0_13 = arith.constant 0 : index
      %13 = vector.load %arg5[%c0_12, %c0_13] : memref<1x128xf32, #tpu.memory_space<vmem>>, vector<1x128xf32>
      %14 = vector.broadcast %13 : vector<1x128xf32> to vector<64x128xf32>
      %15 = arith.addf %12, %14 : vector<64x128xf32>
      %c0_14 = arith.constant 0 : index
      %c0_15 = arith.constant 0 : index
      %16 = vector.load %arg6[%c0_14, %c0_15] : memref<64x128xf32, #tpu.memory_space<vmem>>, vector<64x128xf32>
      tpu.vector_store %arg6[%c0_14, %c0_15], %15 {strides = array<i32>} : memref<64x128xf32, #tpu.memory_space<vmem>>, vector<64x128xf32>,
    } else {
    }
    return
  }
  func.func @transform_0(%arg0: i32, %arg1: i32, %arg2: i32) -> (i32, i32) {
    %c0_i32 = arith.constant 0 : i32
    return %arg0, %arg2 : i32, i32
  }
  func.func @transform_1(%arg0: i32, %arg1: i32, %arg2: i32) -> (i32, i32) {
    %c0_i32 = arith.constant 0 : i32
    return %arg2, %arg1 : i32, i32
  }
  func.func @transform_2(%arg0: i32, %arg1: i32, %arg2: i32) -> (i32, i32) {
    %c0_i32 = arith.constant 0 : i32
    %c0_i32_0 = arith.constant 0 : i32
    return %c0_i32, %arg1 : i32, i32
  }
  func.func @transform_3(%arg0: i32, %arg1: i32, %arg2: i32) -> (i32, i32) {
    %c0_i32 = arith.constant 0 : i32
    return %arg0, %arg1 : i32, i32
  }
}

</mosaic_0001>

<bundles_post_ra>
// kernel: tpu_custom_call.1
= control target key start
LH: loop header
LB: loop body
LE: loop exit
PB: predicated region body
PF: predicated region fallthrough
CT: control target
= control target key end

     0   :  { %8 = vsyncpa [#allocation4], 0  ;;  %s1211_s0 = inlined_call_operand.hbm [shape: f32[64,128], index: 0, kind: input, shape index: {}]   ;;  %s1212_s1 = inlined_call_operand.hbm [shape: f32[128,384], index: 1, kind: input, shape index: {}]   ;;  %s1213_s2 = inlined_call_operand.vmem [shape: f32[1,384], index: 2, kind: input, shape index: {}]   ;;  %s1214_s3 = inlined_call_operand.hbm [shape: f32[64,384], index: 3, kind: output, shape index: {}]  }
   0x1   :  { %9 = vsyncpa [#allocation7], 0 }
   0x2   :  { %11 = vsyncpa [#allocation7 + $0x1], 0 }
   0x3   :  { %12 = vsyncpa [#allocation5], 0 }
   0x4   :  { %14 = vsyncpa [#allocation5 + $0x1], 0  ;;  %s971_s12 = smov 0   ;;  %s973_s13 = smov 0  }
   0x5   :  { %s975_s14 = smov 0   ;;  %s977_s15 = smov 0  }
   0x6   :  { %s979_s16 = smov 0   ;;  %s981_s17 = smov 0  }
   0x7 LB: > { %s585_s18 = sadd.s32 4294967295, %s940_s17   ;;  %s586_s19 = sadd.s32 4294967294, %s940_s17   ;;  %s940_s17 = sphi %s981_s17, %s20_s17   ;;  %s936_s16 = sphi %s979_s16, %s1241_s16   ;;  %s932_s15 = sphi %s977_s15, %s1240_s15   ;;  %s928_s14 = sphi %s975_s14, %s1239_s14   ;;  %s924_s13 = sphi %s973_s13, %s1238_s13   ;;  %s920_s12 = sphi %s971_s12, %s1237_s12  }
   0x8   : > { %p83_p0 = scmp.ne.s32.totalorder %s928_s14, %s924_s13  ;;  %p84_p1 = scmp.eq.s32.totalorder %s940_s17, 0 }
   0x9   : > { %p89_p2 = scmp.ne.s32.totalorder %s924_s13, %s920_s12  ;;  %p1008_p3 = scmp.eq.s32.totalorder %s585_s18, 0 }
   0xa   : > { %p1012_p4 = por %p84_p1, %p83_p0  ;;  %p141_p5 = scmp.eq.s32.totalorder %s585_s18, 2 }
   0xb   : > { %s1222_s20 = scalar_select %p1008_p3, 1, 0 }
   0xc   : > { %p1018_p6 = por %p1008_p3, %p89_p2  ;;  %p147_p7 = scmp.eq.s32.totalorder %s586_s19, 2 }
   0xd   : > { %p1022_p8 = por %p141_p5, %p83_p0  ;;  %p587_p9 = scmp.ge.s32.totalorder %s940_s17, 1 }
   0xe   : > { %s1224_s22 = scalar_select %p1018_p6, 1, 0 }
   0xf   : > { %s1225_s23 = scalar_select %p1022_p8, 1, 0 }
  0x10   : > { %p1027_p10 = por %p147_p7, %p89_p2  ;;  %p154_p11 = scmp.lt.s32.totalorder %s940_s17, 4 }
  0x11   : > { %s942_s26 = smov [#allocation3]   ;;  %p738_p0 = scmp.lt.s32.totalorder %s940_s17, 3 }
  0x12   : > { %s1226_s24 = scalar_select %p1027_p10, 1, 0 }
  0x13   : > { %p1032_p12 = pnand %p587_p9, %p154_p11  ;;  %s170_s27 = sshll.u32 %s942_s26, 4  ;;  %s171_s27 = int_to_ptr.vmem [resolvable:$true] %s170_s27 }
  0x14   : > { %p1047_p2 = pnand %p738_p0, %p1012_p4  ;;  %s35_s30 = sadd.s32 1, %s936_s16 }
  0x15   : > { %s1227_s25 = scalar_select %p1032_p12, 1, 0 }
  0x16   : > { %p725_p13 = pneg %p1032_p12  ;;  %s796_s6 = scalar_lea.hbm %s1211_s0, 1024 }
  0x17   : > { %s1229_s29 = scalar_select %p1047_p2, 1, 0 }
  0x18   : > { %p1041_p1 = pnand %p725_p13, %p1008_p3  ;;  %p797_p5 = scmp.ne.s32.totalorder %s1211_s0, %s796_s6 }
  0x19   : > { %p803_p4 = scmp.lt.u32.totalorder %s796_s6, %s1211_s0 }
  0x1a   : > { %p798_p7 = pneg %p1041_p1 }
  0x1c   : > { %p799_p9 = pnand %p798_p7, %p797_p5 }
  0x1e   : > { %p800_p11 = pneg %p799_p9 }
  0x20   : > { %p805_p13 = pnand %p803_p4, %p800_p11 }
  0x22   : > { %808 = shalt.err (!%p805_p13)
}
  0x23   : > { %s809_s11 = scalar_lea.vmem %s171_s27, 1024  ;;  %p817_p6 = scmp.lt.s32.totalorder %s171_s27, %s171_s27 }
  0x24   : > { %p810_p0 = scmp.ne.s32.totalorder %s171_s27, %s809_s11  ;;  %p818_p3 = scmp.lt.s32.totalorder %s809_s11, %s809_s11 }
  0x26   : > { %p812_p10 = pnand %p810_p0, %p798_p7  ;;  %p819_p12 = por %p818_p3, %p817_p6 }
  0x28   : > { %p813_p8 = pneg %p812_p10 }
  0x2a   : > { %p820_p2 = pnand %p819_p12, %p813_p8 }
  0x2c   : > { %823 = shalt.err (!%p820_p2)
}
  0x2d   : > { %s1221_s18 = smov 128   ;;  %s944_s19 = smov 8  }
  0x2e   : > { %728 = dma.hbm_to_vmem [thread:$0]  (!%p1041_p1), %s1211_s0, 1024, %s171_s27, [#allocation4], %s1221_s18, %s1221_s18, %s944_s19  }
  0x2f   : > { %p37_p10 = scmp.ge.s32.totalorder %s35_s30, 3  ;;  %s76_s4 = sadd.s32 1, %s928_s14 }
  0x30   : > { %s184_s5 = sand.u32 1, %s928_s14   ;;  %s591_s8 = sshll.u32 %s936_s16, 7 }
  0x31   : > { %s1243_s30 = smov (%p37_p10, %s35_s30), 0  ;;  %s590_s6 = sshll.u32 %s184_s5, 7 }
  0x32   : > { %s72_s7 = ssub.s32 %s936_s16, %s1243_s30  ;;  %s1081_s10 = scalar_lea.hbm %s1212_s1, %s591_s8 }
  0x33   : > { %p74_p3 = scmp.eq.s32.totalorder %s72_s7, 0  ;;  %s188_s27 = scalar_lea.vmem [#allocation6], %s590_s6 }
  0x34   : > { %s197_s11 = sshll.u32 %s188_s27, 4  ;;  %s1088_s26 = scalar_lea.sflag [#allocation7], %s184_s5  ;;  %s1086_s11 = int_to_ptr.vmem [resolvable:$true] %s197_s11 }
  0x35   : > { %s1084_s21 = scalar_select %p74_p3, %s928_s14, %s76_s4  }
  0x36   : > { %s824_s18 = scalar_lea.hbm %s1081_s10, 2048  ;;  %p1230_p8 = scmp.ne.s32.totalorder %s1229_s29, 0 }
  0x37   : > { %p825_p6 = scmp.ne.s32.totalorder %s1081_s10, %s824_s18  ;;  %s829_s28 = scalar_lea.hbm %s1212_s1, 6144 }
  0x38   : > { %p826_p12 = pneg %p1230_p8  ;;  %p830_p5 = scmp.lt.u32.totalorder %s1081_s10, %s1212_s1 }
  0x39   : > { %p831_p7 = scmp.lt.u32.totalorder %s829_s28, %s824_s18  ;;  %p833_p11 = scmp.lt.u32.totalorder %s824_s18, %s1081_s10 }
  0x3a   : > { %p827_p1 = pnand %p826_p12, %p825_p6 }
  0x3b   : > { %p832_p9 = por %p831_p7, %p830_p5 }
  0x3c   : > { %p828_p2 = pneg %p827_p1 }
  0x3d   : > { %p834_p4 = por %p833_p11, %p832_p9 }
  0x3f   : > { %p835_p13 = pnand %p834_p4, %p828_p2 }
  0x41   : > { %838 = shalt.err (!%p835_p13)
}
  0x42   : > { %s839_s4 = scalar_lea.vmem %s1086_s11, 2048  ;;  %s945_s5 = smov [#allocation6]  }
  0x43   : > { %p840_p0 = scmp.ne.s32.totalorder %s1086_s11, %s839_s4  ;;  %s844_s27 = sshll.u32 %s945_s5, 4  ;;  %s845_s27 = int_to_ptr.vmem [resolvable:$false] %s844_s27 }
  0x44   : > { %s846_s7 = scalar_lea.vmem %s845_s27, 4096  ;;  %p847_p6 = scmp.lt.s32.totalorder %s1086_s11, %s845_s27 }
  0x45   : > { %p842_p10 = pnand %p840_p0, %p826_p12  ;;  %p848_p1 = scmp.lt.s32.totalorder %s846_s7, %s839_s4 }
  0x47   : > { %p843_p3 = pneg %p842_p10  ;;  %p849_p5 = por %p848_p1, %p847_p6 }
  0x49   : > { %p850_p7 = pnand %p849_p5, %p843_p3 }
  0x4b   : > { %853 = shalt.err (!%p850_p7)
}
  0x4c   : > { %s946_s18 = smov 384   ;;  %s1231_s8 = smov 128  }
  0x4d   : > { %732 = dma.hbm_to_vmem [thread:$0]  (!%p1230_p8), %s1081_s10, 2048, %s1086_s11, %s1088_s26, %s946_s18, %s1231_s8, %s944_s19  }
  0x4e   : > { %p1232_p12 = scmp.ne.s32.totalorder %s1227_s25, 0 }
  0x4f   : > { %p1233_p2 = scmp.ne.s32.totalorder (!%p1232_p12), %s1222_s20, 0 }
  0x50   : > { %215 = sbr.rel (%p1232_p12) target bundleno = 362 (0x16a), region = 32 }
  0x57   : > { %907 = dma.done.wait (%p1233_p2), [#allocation4], 1024  }
  0x58   : > { %909 = vsyncadd (%p1233_p2), [#allocation4], 4294966272  ;;  %s1125_s28 = sand.u32 1, %s924_s13   ;;  %p1234_p8 = scmp.ne.s32.totalorder %s1224_s22, 0 }
  0x59   : > { %s594_s29 = sshll.u32 %s1125_s28, 7  ;;  %s222_s6 = scalar_lea.sflag [#allocation7], %s1125_s28 }
  0x5a   : > { %s1129_s9 = scalar_lea.vmem [#allocation6], %s594_s29 }
  0x5b   : > { %911 = dma.done.wait (%p1234_p8), %s222_s6, 2048  }
  0x5c   : > { %913 = vsyncadd (%p1234_p8), %s222_s6, 4294965248  ;;  %v285_v0 = vld [vmem:[%s1129_s9] sm:$0xff]  ;;  %v286_v1 = vld [vmem:[%s1129_s9 + $0x8] sm:$0xff]  ;;  %p253_p9 = scmp.lt.s32.totalorder %s932_s15, 2  ;;  %s595_s10 = sshll.u32 %s1125_s28, 6 }
  0x5d   : > { %v287_v2 = vld [vmem:[%s1129_s9 + $0x10] sm:$0xff]  ;;  %v669_v3 = vpack.c.bf16 %v286_v1, %v285_v0  ;;  %v288_v4 = vld [vmem:[%s1129_s9 + $0x18] sm:$0xff]  ;;  %v289_v6 = vld [vmem:[%s1129_s9 + $0x20] sm:$0xff]  ;;  %s250_s11 = scalar_lea.vmem [#allocation8], %s595_s10  ;;  %s598_s4 = sshll.u32 %s932_s15, 7 }
  0x5e   : > { %v673_v5 = vpack.c.bf16 %v288_v4, %v287_v2  ;;  %v290_v7 = vld [vmem:[%s1129_s9 + $0x28] sm:$0xff]  ;;  %v277_v9 = vld [vmem:[#allocation3] sm:$0xff]  ;;  %v291_v11 = vld [vmem:[%s1129_s9 + $0x30] sm:$0xff]  ;;  %s254_s20 = scalar_select %p253_p9, %s932_s15, 2 }
  0x5f   : > { %670 = vmatprep.subr.bf16.mxu0 %v669_v3  ;;  %701 = vmatprep.subr.bf16.mxu1 %v669_v3  ;;  %v677_v8 = vpack.c.bf16 %v290_v7, %v289_v6  ;;  %v281_v10 = vld [vmem:[#allocation3 + $0x20] sm:$0xff]  ;;  %v292_v12 = vld [vmem:[%s1129_s9 + $0x38] sm:$0xff]  ;;  %v294_v15 = vld [vmem:[%s1129_s9 + $0x48] sm:$0xff]  ;;  %s472_s26 = sshll.u32 %s250_s11, 4  ;;  %s1163_s15 = scalar_lea.hbm %s1214_s3, %s598_s4  ;;  %s1158_s26 = int_to_ptr.vmem [resolvable:$true] %s472_s26 }
  0x60   : > { %672 = vmatpush3.bf16.msra.mxu0 %v669_v3  ;;  %709 = vmatpush3.bf16.msra.mxu1 %v669_v3  ;;  %v681_v13 = vpack.c.bf16 %v292_v12, %v291_v11  ;;  %v293_v14 = vld [vmem:[%s1129_s9 + $0x40] sm:$0xff]  ;;  %v295_v17 = vld [vmem:[%s1129_s9 + $0x50] sm:$0xff]  ;;  %v296_v18 = vld [vmem:[%s1129_s9 + $0x58] sm:$0xff]  ;;  %s255_s19 = scalar_lea.vmem %s1213_s2, %s254_s20  ;;  %s457_s7 = scalar_lea.sflag [#allocation5], %s1125_s28 }
  0x61   : > { %674 = vmatprep.subr.bf16.mxu0 %v673_v5  ;;  %702 = vmatprep.subr.bf16.mxu1 %v673_v5  ;;  %v685_v16 = vpack.c.bf16 %v294_v15, %v293_v14  ;;  %v689_v19 = vpack.c.bf16 %v296_v18, %v295_v17  ;;  %v297_v20 = vld [vmem:[%s1129_s9 + $0x60] sm:$0xff]  ;;  %v298_v21 = vld [vmem:[%s1129_s9 + $0x68] sm:$0xff]  ;;  %v299_v23 = vld [vmem:[%s1129_s9 + $0x70] sm:$0xff]  ;;  %s854_s18 = scalar_lea.vmem %s1158_s26, 1024  ;;  %p1235_p4 = scmp.ne.s32.totalorder %s1225_s23, 0 }
  0x62   : > { %657 = vmatprep.mubr.f32.mxu0 %v277_v9  ;;  %663 = vmatprep.mubr.f32.mxu1 %v281_v10  ;;  %v693_v22 = vpack.c.bf16 %v298_v21, %v297_v20  ;;  %v300_v24 = vld [vmem:[%s1129_s9 + $0x78] sm:$0xff]  ;;  %v278_v26 = vld [vmem:[#allocation3 + $0x8] sm:$0xff]  ;;  %v279_v28 = vld [vmem:[#allocation3 + $0x10] sm:$0xff]  ;;  %p855_p11 = scmp.ne.s32.totalorder %s1158_s26, %s854_s18  ;;  %s947_s8 = smov [#allocation8]  }
  0x63   : > { %v697_v25 = vpack.c.bf16 %v300_v24, %v299_v23  ;;  %v282_v27 = vld [vmem:[#allocation3 + $0x28] sm:$0xff]  ;;  %v283_v29 = vld [vmem:[#allocation3 + $0x30] sm:$0xff]  ;;  %v280_v30 = vld [vmem:[#allocation3 + $0x18] sm:$0xff]  ;;  %s858_s29 = sshll.u32 %s947_s8, 4  ;;  %s859_s29 = int_to_ptr.vmem [resolvable:$false] %s858_s29 }
  0x64   : > { %676 = vmatpush3.bf16.msra.mxu0 %v673_v5  ;;  %710 = vmatpush3.bf16.msra.mxu1 %v673_v5  ;;  %v284_v31 = vld [vmem:[#allocation3 + $0x38] sm:$0xff]  ;;  %v596_v32 = vld [vmem:[%s255_s19] ss:$0 sm:$0xff]  ;;  %p856_p13 = pnand %p855_p11, %p1235_p4  ;;  %s860_s6 = scalar_lea.vmem %s859_s29, 2048 }
  0x65   : > { %678 = vmatprep.subr.bf16.mxu0 %v677_v8  ;;  %703 = vmatprep.subr.bf16.mxu1 %v677_v8  ;;  %p861_p10 = scmp.lt.s32.totalorder %s1158_s26, %s859_s29  ;;  %p862_p3 = scmp.lt.s32.totalorder %s860_s6, %s854_s18 }
  0x66   : > { %p857_p0 = pneg %p856_p13 }
  0x67   : > { %p863_p6 = por %p862_p3, %p861_p10 }
  0x68   : > { %680 = vmatpush3.bf16.msra.mxu0 %v677_v8  ;;  %711 = vmatpush3.bf16.msra.mxu1 %v677_v8 }
  0x69   : > { %682 = vmatprep.subr.bf16.mxu0 %v681_v13  ;;  %704 = vmatprep.subr.bf16.mxu1 %v681_v13  ;;  %p864_p1 = pnand %p863_p6, %p857_p0 }
  0x6c   : > { %684 = vmatpush3.bf16.msra.mxu0 %v681_v13  ;;  %712 = vmatpush3.bf16.msra.mxu1 %v681_v13 }
  0x6d   : > { %686 = vmatprep.subr.bf16.mxu0 %v685_v16  ;;  %705 = vmatprep.subr.bf16.mxu1 %v685_v16 }
  0x70   : > { %688 = vmatpush3.bf16.msra.mxu0 %v685_v16  ;;  %713 = vmatpush3.bf16.msra.mxu1 %v685_v16 }
  0x71   : > { %690 = vmatprep.subr.bf16.mxu0 %v689_v19  ;;  %706 = vmatprep.subr.bf16.mxu1 %v689_v19 }
  0x74   : > { %692 = vmatpush3.bf16.msra.mxu0 %v689_v19  ;;  %714 = vmatpush3.bf16.msra.mxu1 %v689_v19 }
  0x75   : > { %694 = vmatprep.subr.bf16.mxu0 %v693_v22  ;;  %707 = vmatprep.subr.bf16.mxu1 %v693_v22 }
  0x78   : > { %696 = vmatpush3.bf16.msra.mxu0 %v693_v22  ;;  %715 = vmatpush3.bf16.msra.mxu1 %v693_v22 }
  0x79   : > { %698 = vmatprep.subr.bf16.mxu0 %v697_v25  ;;  %708 = vmatprep.subr.bf16.mxu1 %v697_v25 }
  0x7c   : > { %700 = vmatpush3.bf16.msra.mxu0 %v697_v25  ;;  %716 = vmatpush3.bf16.msra.mxu1 %v697_v25 }
  0x7f   : > { %658 = vmatmul.mubr.f32.vlgmr.msra.gmra.mrb[0].mxu0 %v278_v26  ;;  %664 = vmatmul.mubr.f32.vlgmr.msra.gmra.mrb[0].mxu1 %v282_v27 }
  0x80   : > { %660 = vmatprep.mubr.f32.mxu0 %v279_v28  ;;  %666 = vmatprep.mubr.f32.mxu1 %v283_v29 }
  0x83   : > { %661 = vmatmul.mubr.f32.gmra.mrb[2].mxu0 %v280_v30  ;;  %667 = vmatmul.mubr.f32.gmra.mrb[2].mxu1 %v284_v31 }
 0x152   : > { %v659_v33 = vpop.f32.mrb[0].mxu0  ;;  %v665_v34 = vpop.f32.mrb[0].mxu1 }
 0x153   : > { %v441_v35 = vadd.f32 %v659_v33, %v596_v32  ;;  %v445_v36 = vadd.f32 %v665_v34, %v596_v32  ;;  %v367_v37 = vpop.f32.mrb[1].mxu0  ;;  %v387_v38 = vpop.f32.mrb[1].mxu1 }
 0x154   : > { %v440_v39 = vadd.f32 %v596_v32, %v367_v37  ;;  %v444_v40 = vadd.f32 %v596_v32, %v387_v38 }
 0x155   : > { %449 = vst [vmem:[%s250_s11 + $0x8] sm:$0xff] %v441_v35  ;;  %453 = vst [vmem:[%s250_s11 + $0x28] sm:$0xff] %v445_v36 }
 0x156   : > { %448 = vst [vmem:[%s250_s11] sm:$0xff] %v440_v39  ;;  %452 = vst [vmem:[%s250_s11 + $0x20] sm:$0xff] %v444_v40  ;;  %v662_v41 = vpop.f32.mrb[2].mxu0  ;;  %v668_v42 = vpop.f32.mrb[2].mxu1 }
 0x157   : > { %v443_v43 = vadd.f32 %v662_v41, %v596_v32  ;;  %v447_v44 = vadd.f32 %v668_v42, %v596_v32  ;;  %v377_v45 = vpop.f32.mrb[3].mxu0  ;;  %v397_v46 = vpop.f32.mrb[3].mxu1 }
 0x158   : > { %v442_v47 = vadd.f32 %v596_v32, %v377_v45  ;;  %v446_v48 = vadd.f32 %v596_v32, %v397_v46 }
 0x159   : > { %451 = vst [vmem:[%s250_s11 + $0x18] sm:$0xff] %v443_v43  ;;  %455 = vst [vmem:[%s250_s11 + $0x38] sm:$0xff] %v447_v44 }
 0x15a   : > { %450 = vst [vmem:[%s250_s11 + $0x10] sm:$0xff] %v442_v47  ;;  %454 = vst [vmem:[%s250_s11 + $0x30] sm:$0xff] %v446_v48 }
 0x15b   : > { %867 = shalt.err (!%p864_p1)
}
 0x15c   : > { %s868_s9 = scalar_lea.hbm %s1163_s15, 1024  ;;  %s872_s25 = scalar_lea.hbm %s1214_s3, 3072 }
 0x15d   : > { %p869_p5 = scmp.ne.s32.totalorder %s1163_s15, %s868_s9  ;;  %p873_p2 = scmp.lt.u32.totalorder %s1163_s15, %s1214_s3 }
 0x15e   : > { %p874_p8 = scmp.lt.u32.totalorder %s872_s25, %s868_s9  ;;  %p876_p11 = scmp.lt.u32.totalorder %s868_s9, %s1163_s15 }
 0x15f   : > { %p870_p7 = pnand %p869_p5, %p1235_p4 }
 0x160   : > { %p875_p9 = por %p874_p8, %p873_p2 }
 0x161   : > { %p871_p12 = pneg %p870_p7 }
 0x162   : > { %p877_p13 = por %p876_p11, %p875_p9 }
 0x164   : > { %p878_p0 = pnand %p877_p13, %p871_p12 }
 0x166   : > { %881 = shalt.err (!%p878_p0)
}
 0x167   : > { %s948_s11 = smov 128   ;;  %s949_s4 = smov 384  }
 0x168   : > { %s950_s5 = smov 8  }
 0x169   : > { %723 = dma.vmem_to_hbm [thread:$0]  (%p1235_p4), %s1158_s26, 1024, %s1163_s15, %s457_s7, %s948_s11, %s949_s4, %s950_s5  }
 0x16a PF: > { %p740_p10 = scmp.ge.s32.totalorder %s940_s17, 2  ;;  %s487_s27 = sand.u32 1, %s920_s12  }
 0x16b   : > { %p1236_p3 = scmp.ne.s32.totalorder %s1226_s24, 0  ;;  %s488_s18 = scalar_lea.sflag [#allocation5], %s487_s27 }
 0x16d   : > { %p734_p6 = pnand %p740_p10, %p1236_p3 }
 0x16f   : > { %915 = dma.done.wait (!%p734_p6), %s488_s18, 1024  }
 0x170   : > { %917 = vsyncadd (!%p734_p6), %s488_s18, 4294966272  ;;  %s20_s17 = sadd.s32 1, %s940_s17   ;;  %s1237_s12 = smov %s924_s13 }
 0x171   : > { %p17_p1 = scmp.ge.s32.totalorder %s20_s17, 5   ;;  %s1238_s13 = smov %s928_s14 }
 0x172   : > { %s1239_s14 = smov %s1084_s21  ;;  %s1240_s15 = smov %s936_s16 }
 0x173   : > { %s1241_s16 = smov %s1243_s30  ;;  %19 = sbr.rel (!%p17_p1) target bundleno = 7 (0x7), region = 94 }
 0x17a   :  { %493 = vsyncpa [#allocation4], 1 }
 0x17b   :  { %495 = vsyncpa [#allocation4 + $0x1], 1 }
 0x17c   :  { %496 = vsyncpa [#allocation7], 1 }
 0x17d   :  { %498 = vsyncpa [#allocation7 + $0x1], 1 }
 0x17e   :  { %499 = vsyncpa [#allocation5], 1 }
 0x17f   :  { %501 = vsyncpa [#allocation5 + $0x1], 1 }

</bundles_post_ra>
